<compile_context>
chip_gen: v7x
topology: tpu7x:2x2x1
jax: 0.10.0
libtpu: 0.0.40
codegen_flags: <defaults>
</compile_context>

<pallas_src>
import functools
import math

import jax
import jax.numpy as jnp
from jax.experimental import pallas as pl
from jax.experimental.pallas import tpu as pltpu


def _round_up(x, m):
    return (x + m - 1) // m * m


# ---------------------------------------------------------------------------
# Pallas kernels
# ---------------------------------------------------------------------------
def _conv_stats_kernel(p_ref, w_ref, y_ref, stats_ref):
    """One M-tile of the transposed-conv matmul (bf16 in, f32 acc) + per-tile BN partials."""
    y = jnp.dot(p_ref[...], w_ref[...], preferred_element_type=jnp.float32)  # (tm, C_pad) f32
    y_ref[...] = y.astype(y_ref.dtype)                                       # bf16 intermediate

    c = y.shape[1]
    s = jnp.sum(y, axis=0, keepdims=True)          # (1, C_pad)  channel sum (f32)
    ss = jnp.sum(y * y, axis=0, keepdims=True)     # (1, C_pad)  channel sum of squares (f32)
    row = jax.lax.broadcasted_iota(jnp.int32, (8, c), 0)
    stats = jnp.where(row == 0, s, jnp.where(row == 1, ss, 0.0))             # rows 0/1 used
    stats_ref[...] = stats[None]                                             # (1, 8, C_pad)


def _bn_relu_kernel(y_ref, scale_ref, shift_ref, o_ref, *, relu):
    """Folded BatchNorm (y*scale + shift) + optional ReLU; f32 elementwise math."""
    o = y_ref[...].astype(jnp.float32) * scale_ref[...] + shift_ref[...]
    if relu:
        o = jnp.maximum(o, 0.0)
    o_ref[...] = o.astype(o_ref.dtype)


# ---------------------------------------------------------------------------
# Glue: dilation / padding / im2col for ConvTranspose3d
# ---------------------------------------------------------------------------
def _im2col_transposed(x, k, stride, padding, output_padding, dtype=None):
    """ConvTranspose3d as a regular conv on a dilated+padded input; patches ordered
    (C_in, kd, kh, kw) along the contraction dim."""
    if dtype is not None:
        x = x.astype(dtype)
    n, cin, d, h, w = x.shape

    do = (d - 1) * stride - 2 * padding + k + output_padding
    ho = (h - 1) * stride - 2 * padding + k + output_padding
    wo = (w - 1) * stride - 2 * padding + k + output_padding

    if stride > 1:
        dd, hd, wd = (d - 1) * stride + 1, (h - 1) * stride + 1, (w - 1) * stride + 1
        xd = jnp.zeros((n, cin, dd, hd, wd), x.dtype)
        xd = xd.at[:, :, ::stride, ::stride, ::stride].set(x)
    else:
        xd = x

    lo = k - 1 - padding
    hi = k - 1 - padding + output_padding
    assert lo >= 0, "padding must be <= kernel_size - 1 for this lowering"
    xp = jnp.pad(xd, ((0, 0), (0, 0), (lo, hi), (lo, hi), (lo, hi)))

    slices = []
    for kd in range(k):
        for kh in range(k):
            for kw in range(k):
                slices.append(xp[:, :, kd:kd + do, kh:kh + ho, kw:kw + wo])
    # (N, C_in, k^3, Do, Ho, Wo) -> (N, Do, Ho, Wo, C_in, k^3) -> (M, C_in*k^3)
    patches = jnp.stack(slices, axis=2)
    patches = patches.transpose(0, 3, 4, 5, 1, 2).reshape(n * do * ho * wo, cin * k ** 3)
    return patches, (n, do, ho, wo)


def _weight_matrix(weight):
    """ConvTranspose3d weight (C_in, C_out, k, k, k) -> (C_in*k^3, C_out), kernel flipped."""
    cin, cout, k, _, _ = weight.shape
    w_flip = weight[:, :, ::-1, ::-1, ::-1]
    return w_flip.transpose(0, 2, 3, 4, 1).reshape(cin * k ** 3, cout)


# ---------------------------------------------------------------------------
# Forward pass (matches Deconv3d.forward with bn=True, training-mode BN, relu=True)
# ---------------------------------------------------------------------------
def deconv3d_forward(x, weight, gamma, beta, *, stride=1, padding=0,
                     output_padding=0, eps=1e-5, relu=True, tm=512):
    assert stride in (1, 2)
    n, cin, _, _, _ = x.shape
    cin_w, cout, k, _, _ = weight.shape
    assert cin == cin_w

    # bf16 patches / weights for the MXU (accumulation stays f32 inside the kernel)
    patches, (n_, do, ho, wo) = _im2col_transposed(
        x, k, stride, padding, output_padding, dtype=jnp.bfloat16)
    w_mat = _weight_matrix(weight).astype(jnp.bfloat16)

    m, kdim = patches.shape
    k_pad = _round_up(kdim, 128)           # lane-dense contraction dim
    c_pad = _round_up(cout, 128)           # lane-dense output channels
    tm_eff = min(tm, _round_up(m, 128))    # big rows-per-step tiles, aligned
    m_pad = _round_up(m, tm_eff)
    n_tiles = m_pad // tm_eff

    patches = jnp.pad(patches, ((0, m_pad - m), (0, k_pad - kdim)))
    w_mat = jnp.pad(w_mat, ((0, k_pad - kdim), (0, c_pad - cout)))

    cparams = pltpu.CompilerParams(dimension_semantics=("parallel",),
                                   vmem_limit_bytes=32 * 1024 * 1024)

    # --- kernel 1: matmul + per-tile BN partial stats (parallel grid) ---
    y, stats = pl.pallas_call(
        _conv_stats_kernel,
        out_shape=(jax.ShapeDtypeStruct((m_pad, c_pad), jnp.bfloat16),
                   jax.ShapeDtypeStruct((n_tiles, 8, c_pad), jnp.float32)),
        grid_spec=pltpu.PrefetchScalarGridSpec(
            num_scalar_prefetch=0,
            grid=(n_tiles,),
            in_specs=[pl.BlockSpec((tm_eff, k_pad), lambda i: (i, 0)),
                      pl.BlockSpec((k_pad, c_pad), lambda i: (0, 0))],
            out_specs=(pl.BlockSpec((tm_eff, c_pad), lambda i: (i, 0)),
                       pl.BlockSpec((1, 8, c_pad), lambda i: (i, 0, 0)))),
        compiler_params=cparams,
    )(patches, w_mat)

    # --- tiny finalize in XLA: reduce per-tile partials, fold BN into scale/shift ---
    # (zero-padded M rows / C columns contribute 0 to the sums; divide by the true m)
    ch_sum = jnp.sum(stats[:, 0, :], axis=0)
    ch_sq = jnp.sum(stats[:, 1, :], axis=0)
    mean = ch_sum / m
    var = jnp.maximum(ch_sq / m - mean * mean, 0.0)   # biased var, PyTorch training-mode BN
    rstd = jax.lax.rsqrt(var + eps)
    gamma_pad = jnp.pad(gamma.astype(jnp.float32), (0, c_pad - cout))
    beta_pad = jnp.pad(beta.astype(jnp.float32), (0, c_pad - cout))
    scale = (gamma_pad * rstd).reshape(1, c_pad)
    shift = (beta_pad - mean * gamma_pad * rstd).reshape(1, c_pad)

    # --- kernel 2: folded BN (y*scale+shift) + ReLU, lane-dense f32 output ---
    out = pl.pallas_call(
        functools.partial(_bn_relu_kernel, relu=relu),
        out_shape=jax.ShapeDtypeStruct((m_pad, c_pad), jnp.float32),
        grid_spec=pltpu.PrefetchScalarGridSpec(
            num_scalar_prefetch=0,
            grid=(n_tiles,),
            in_specs=[pl.BlockSpec((tm_eff, c_pad), lambda i: (i, 0)),
                      pl.BlockSpec((1, c_pad), lambda i: (0, 0)),
                      pl.BlockSpec((1, c_pad), lambda i: (0, 0))],
            out_specs=pl.BlockSpec((tm_eff, c_pad), lambda i: (i, 0))),
        compiler_params=cparams,
    )(y, scale, shift)

    # slice away the M / C_out padding and restore NCDHW (module contract)
    out = out[:m, :cout].reshape(n, do, ho, wo, cout).transpose(0, 4, 1, 2, 3)
    return out


# ---------------------------------------------------------------------------
# Deterministic parameter init (xavier_uniform for conv weight, BN: gamma=1, beta=0)
# ---------------------------------------------------------------------------
def init_params(key, in_channels, out_channels, kernel_size):
    # torch xavier_uniform on ConvTranspose3d weight (C_in, C_out, k, k, k):
    #   fan_in = size(1)*k^3, fan_out = size(0)*k^3
    fan_in = out_channels * kernel_size ** 3
    fan_out = in_channels * kernel_size ** 3
    bound = math.sqrt(6.0 / (fan_in + fan_out))
    weight = jax.random.uniform(
        key, (in_channels, out_channels, kernel_size, kernel_size, kernel_size),
        jnp.float32, -bound, bound)
    gamma = jnp.ones((out_channels,), jnp.float32)
    beta = jnp.zeros((out_channels,), jnp.float32)
    return weight, gamma, beta


# ---------------------------------------------------------------------------
# Pure-JAX f32 reference (same math, no Pallas / no bf16) for a sanity check
# ---------------------------------------------------------------------------
def _reference(x, weight, gamma, beta, *, stride, padding, output_padding, eps, relu):
    patches, (n, do, ho, wo) = _im2col_transposed(x, weight.shape[2], stride,
                                                  padding, output_padding)
    y = patches @ _weight_matrix(weight)
    mean = jnp.mean(y, axis=0, keepdims=True)
    var = jnp.mean((y - mean) ** 2, axis=0, keepdims=True)
    o = (y - mean) / jnp.sqrt(var + eps) * gamma.reshape(1, -1) + beta.reshape(1, -1)
    if relu:
        o = jnp.maximum(o, 0.0)
    cout = weight.shape[1]
    return o.reshape(n, do, ho, wo, cout).transpose(0, 4, 1, 2, 3)


if __name__ == "__main__":
    # Module defaults: in_channels=4, out_channels=8, kernel_size=3, stride=1,
    # bn=True (conv bias disabled), relu=True, BN in training mode.
    N, C_IN, C_OUT, K, STRIDE = 2, 4, 8, 3, 1
    D = H = W = 6   # output spatial = (D-1)*1 + 3 = 8  -> M = 2*8*8*8 = 1024

    key = jax.random.PRNGKey(0)
    kx, kw = jax.random.split(key)
    x = jax.random.normal(kx, (N, C_IN, D, H, W), jnp.float32)
    weight, gamma, beta = init_params(kw, C_IN, C_OUT, K)

    out = deconv3d_forward(x, weight, gamma, beta,
                           stride=STRIDE, padding=0, output_padding=0,
                           eps=1e-5, relu=True)
    out = jax.block_until_ready(out)

    ref = _reference(x, weight, gamma, beta, stride=STRIDE, padding=0,
                     output_padding=0, eps=1e-5, relu=True)

    assert out.shape == (N, C_OUT, D + K - 1, H + K - 1, W + K - 1), out.shape
    assert bool(jnp.all(jnp.isfinite(out)))
    # bf16 MXU inputs / bf16 intermediate vs f32 reference -> loosened tolerance
    assert bool(jnp.allclose(out, ref, atol=5e-2, rtol=5e-2))

    print("KERNEL_OK")
</pallas_src>

<mosaic_0001>
module attributes {stable_mosaic.version = 11 : i64} {
  func.func @_conv_stats_kernel(%arg0: i32, %arg1: memref<512x128xbf16, #tpu.memory_space<vmem>>, %arg2: memref<128x128xbf16, #tpu.memory_space<vmem>>, %arg3: memref<512x128xbf16, #tpu.memory_space<vmem>>, %arg4: memref<1x8x128xf32, #tpu.memory_space<vmem>>) attributes {dimension_semantics = [#tpu.dimension_semantics<parallel>], iteration_bounds = array<i64: 2>, scalar_prefetch = 0 : i64, scratch_operands = 0 : i64, tpu.core_type = #tpu.core_type<tc>, window_params = [{transform_indices = @transform_0, window_bounds = array<i64: 512, 128>}, {pipeline_mode = #tpu.pipeline_mode<synchronous>, transform_indices = @transform_1, window_bounds = array<i64: 128, 128>}, {transform_indices = @transform_2, window_bounds = array<i64: 512, 128>}, {transform_indices = @transform_3, window_bounds = array<i64: 1, 8, 128>}]} {
    %c0 = arith.constant 0 : index
    %c0_0 = arith.constant 0 : index
    %0 = vector.load %arg1[%c0, %c0_0] : memref<512x128xbf16, #tpu.memory_space<vmem>>, vector<512x128xbf16>
    %c0_1 = arith.constant 0 : index
    %c0_2 = arith.constant 0 : index
    %1 = vector.load %arg2[%c0_1, %c0_2] : memref<128x128xbf16, #tpu.memory_space<vmem>>, vector<128x128xbf16>
    %cst = arith.constant dense<0.000000e+00> : vector<512x128xf32>
    %2 = tpu.matmul %0, %1, %cst {dimension_numbers = #tpu.dot_dimension_numbers<[1], [0], [0], [1], [0, 0, 1, 1], [], []>} : vector<512x128xbf16>, vector<128x128xbf16>, vector<512x128xf32> -> vector<512x128xf32>
    %3 = arith.truncf %2 : vector<512x128xf32> to vector<512x128xbf16>
    %c0_3 = arith.constant 0 : index
    %c0_4 = arith.constant 0 : index
    %4 = vector.load %arg3[%c0_3, %c0_4] : memref<512x128xbf16, #tpu.memory_space<vmem>>, vector<512x128xbf16>
    tpu.vector_store %arg3[%c0_3, %c0_4], %3 {strides = array<i32>} : memref<512x128xbf16, #tpu.memory_space<vmem>>, vector<512x128xbf16>,
    %cst_5 = arith.constant dense<0.000000e+00> : vector<128xf32>
    %5 = vector.multi_reduction <add>, %2, %cst_5 [0] : vector<512x128xf32> to vector<128xf32>
    %6 = vector.shape_cast %5 : vector<128xf32> to vector<1x128xf32>
    %7 = arith.mulf %2, %2 : vector<512x128xf32>
    %cst_6 = arith.constant dense<0.000000e+00> : vector<128xf32>
    %8 = vector.multi_reduction <add>, %7, %cst_6 [0] : vector<512x128xf32> to vector<128xf32>
    %9 = vector.shape_cast %8 : vector<128xf32> to vector<1x128xf32>
    %10 = tpu.iota {dimensions = array<i32: 0>} : vector<8x128xi32>
    %c0_i32 = arith.constant 0 : i32
    %11 = vector.broadcast %c0_i32 : i32 to vector<8x128xi32>
    %12 = arith.cmpi eq, %10, %11 : vector<8x128xi32>
    %c1_i32 = arith.constant 1 : i32
    %13 = vector.broadcast %c1_i32 : i32 to vector<8x128xi32>
    %14 = arith.cmpi eq, %10, %13 : vector<8x128xi32>
    %cst_7 = arith.constant 0.000000e+00 : f32
    %15 = vector.shape_cast %9 : vector<1x128xf32> to vector<1x128xf32>
    %16 = vector.broadcast %15 : vector<1x128xf32> to vector<8x128xf32>
    %17 = vector.broadcast %cst_7 : f32 to vector<8x128xf32>
    %18 = arith.select %14, %16, %17 : vector<8x128xi1>, vector<8x128xf32>
    %19 = vector.shape_cast %6 : vector<1x128xf32> to vector<1x128xf32>
    %20 = vector.broadcast %19 : vector<1x128xf32> to vector<8x128xf32>
    %21 = arith.select %12, %20, %18 : vector<8x128xi1>, vector<8x128xf32>
    %22 = vector.shape_cast %21 : vector<8x128xf32> to vector<1x8x128xf32>
    %c0_8 = arith.constant 0 : index
    %c0_9 = arith.constant 0 : index
    %c0_10 = arith.constant 0 : index
    %23 = vector.load %arg4[%c0_8, %c0_9, %c0_10] : memref<1x8x128xf32, #tpu.memory_space<vmem>>, vector<1x8x128xf32>
    tpu.vector_store %arg4[%c0_8, %c0_9, %c0_10], %22 {strides = array<i32>} : memref<1x8x128xf32, #tpu.memory_space<vmem>>, vector<1x8x128xf32>,
    return
  }
  func.func @transform_0(%arg0: i32) -> (i32, i32) {
    %c0_i32 = arith.constant 0 : i32
    %c0_i32_0 = arith.constant 0 : i32
    return %arg0, %c0_i32 : i32, i32
  }
  func.func @transform_1(%arg0: i32) -> (i32, i32) {
    %c0_i32 = arith.constant 0 : i32
    %c0_i32_0 = arith.constant 0 : i32
    %c0_i32_1 = arith.constant 0 : i32
    return %c0_i32, %c0_i32_0 : i32, i32
  }
  func.func @transform_2(%arg0: i32) -> (i32, i32) {
    %c0_i32 = arith.constant 0 : i32
    %c0_i32_0 = arith.constant 0 : i32
    return %arg0, %c0_i32 : i32, i32
  }
  func.func @transform_3(%arg0: i32) -> (i32, i32, i32) {
    %c0_i32 = arith.constant 0 : i32
    %c0_i32_0 = arith.constant 0 : i32
    %c0_i32_1 = arith.constant 0 : i32
    return %arg0, %c0_i32, %c0_i32_0 : i32, i32, i32
  }
}

</mosaic_0001>

<bundles_post_ra>
// kernel: tpu_custom_call.1
= control target key start
LH: loop header
LB: loop body
LE: loop exit
PB: predicated region body
PF: predicated region fallthrough
CT: control target
= control target key end

     0   :  { %9 = vsyncpa [#allocation3], 0  ;;  %s2818_s0 = inlined_call_operand.hbm [shape: bf16[1024,128], index: 0, kind: input, shape index: {}]   ;;  %s2819_s1 = inlined_call_operand.hbm [shape: bf16[128,128], index: 1, kind: input, shape index: {}]   ;;  %s2820_s2 = inlined_call_operand.hbm [shape: bf16[1024,128], index: 2, kind: output, shape index: {0}]   ;;  %s2821_s3 = inlined_call_operand.hbm [shape: f32[2,8,128], index: 3, kind: output, shape index: {1}]  }
   0x1   :  { %11 = vsyncpa [#allocation3 + $0x1], 0 }
   0x2   :  { %12 = vsyncpa [#allocation6], 0 }
   0x3   :  { %13 = vsyncpa [#allocation4], 0 }
   0x4   :  { %15 = vsyncpa [#allocation4 + $0x1], 0 }
   0x5   :  { %16 = vsyncpa [#allocation9], 0 }
   0x6   :  { %18 = vsyncpa [#allocation9 + $0x1], 0  ;;  %s2315_s12 = smov 0   ;;  %s2317_s13 = smov 0  }
   0x7   :  { %s2319_s14 = smov 0   ;;  %s2321_s15 = smov 0  }
   0x8 LB: > { %s2336_s16 = sadd.s32 4294967295, %s2285_s15   ;;  %s1503_s17 = sadd.s32 4294967294, %s2285_s15   ;;  %s2285_s15 = sphi %s2321_s15, %s2841_s15   ;;  %s2281_s14 = sphi %s2319_s14, %s2840_s14   ;;  %s2277_s13 = sphi %s2317_s13, %s2839_s13   ;;  %s2273_s12 = sphi %s2315_s12, %s2838_s12  }
   0x9   : > { %p44_p0 = scmp.ne.s32.totalorder %s2277_s13, %s2273_s12  ;;  %p2822_p1 = scmp.eq.s32.totalorder %s2336_s16, 0 }
   0xa   : > { %p95_p3 = scmp.eq.s32.totalorder %s1503_s17, 1  ;;  %p1504_p5 = scmp.ge.s32.totalorder %s2285_s15, 1 }
   0xb   : > { %p2345_p4 = por %p2822_p1, %p44_p0  ;;  %p128_p7 = scmp.lt.s32.totalorder %s2285_s15, 3 }
   0xc   : > { %p2350_p6 = por %p95_p3, %p44_p0  ;;  %s2287_s21 = smov [#allocation5]  }
   0xd   : > { %s2825_s18 = scalar_select %p2345_p4, 1, 0 }
   0xe   : > { %s2826_s19 = scalar_select %p2350_p6, 1, 0 }
   0xf   : > { %p2355_p8 = pnand %p1504_p5, %p128_p7  ;;  %s140_s22 = sshll.u32 %s2287_s21, 4  ;;  %s2359_s22 = int_to_ptr.vmem [resolvable:$true] %s140_s22 }
  0x10   : > { %s2371_s24 = sadd.s32 1, %s2285_s15   ;;  %s31_s25 = sadd.s32 1, %s2281_s14 }
  0x11   : > { %s2827_s20 = scalar_select %p2355_p8, 1, 0 }
  0x12   : > { %p2029_p9 = pneg %p2355_p8  ;;  %s28_s26 = ssub.s32 %s2285_s15, %s2371_s24 }
  0x13   : > { %s2125_s29 = scalar_lea.hbm %s2819_s1, 1024 }
  0x14   : > { %p2366_p11 = pnand %p2029_p9, %p2822_p1  ;;  %p2126_p12 = scmp.ne.s32.totalorder %s2819_s1, %s2125_s29 }
  0x15   : > { %p2132_p5 = scmp.lt.u32.totalorder %s2125_s29, %s2819_s1 }
  0x16   : > { %p2127_p13 = pneg %p2366_p11 }
  0x18   : > { %p2128_p0 = pnand %p2127_p13, %p2126_p12 }
  0x1a   : > { %p2129_p3 = pneg %p2128_p0 }
  0x1c   : > { %p2134_p7 = pnand %p2132_p5, %p2129_p3 }
  0x1e   : > { %2137 = shalt.err (!%p2134_p7)
}
  0x1f   : > { %s2138_s7 = scalar_lea.vmem %s2359_s22, 1024  ;;  %p2146_p2 = scmp.lt.s32.totalorder %s2359_s22, %s2359_s22 }
  0x20   : > { %p2139_p9 = scmp.ne.s32.totalorder %s2359_s22, %s2138_s7  ;;  %p2147_p6 = scmp.lt.s32.totalorder %s2138_s7, %s2138_s7 }
  0x22   : > { %p2141_p10 = pnand %p2139_p9, %p2127_p13  ;;  %p2148_p4 = por %p2147_p6, %p2146_p2 }
  0x24   : > { %p2142_p1 = pneg %p2141_p10 }
  0x26   : > { %p2149_p8 = pnand %p2148_p4, %p2142_p1 }
  0x28   : > { %2152 = shalt.err (!%p2149_p8)
}
  0x29   : > { %s2288_s8 = smov 64   ;;  %s2289_s9 = smov 4  }
  0x2a   : > { %2032 = dma.hbm_to_vmem [thread:$0]  (!%p2366_p11), %s2819_s1, 1024, %s2359_s22, [#allocation6], %s2288_s8, %s2288_s8, %s2289_s9  }
  0x2b   : > { %p29_p1 = scmp.eq.s32.totalorder %s28_s26, 0  ;;  %p38_p2 = scmp.ne.s32.totalorder %s2281_s14, %s2277_s13 }
  0x2c   : > { %p39_p4 = scmp.eq.s32.totalorder %s2285_s15, 0  ;;  %p2045_p6 = scmp.lt.s32.totalorder %s2285_s15, 2 }
  0x2d   : > { %s2405_s17 = scalar_select %p29_p1, %s2281_s14, %s31_s25  }
  0x2e   : > { %p40_p8 = por %p39_p4, %p38_p2  ;;  %p2829_p10 = scmp.eq.s32.totalorder %s2336_s16, 1 }
  0x2f   : > { %s154_s23 = sand.u32 1, %s2281_s14   ;;  %s1626_s27 = sshll.u32 %s2285_s15, 12 }
  0x30   : > { %p2409_p12 = por %p2829_p10, %p38_p2  ;;  %s1507_s28 = sshll.u32 %s154_s23, 8 }
  0x31   : > { %s2418_s4 = scalar_lea.hbm %s2818_s0, %s1626_s27  ;;  %s158_s22 = scalar_lea.vmem [#allocation2], %s1507_s28 }
  0x32   : > { %s165_s25 = sshll.u32 %s158_s22, 4  ;;  %p2420_p11 = pnand %p2045_p6, %p40_p8  ;;  %s2424_s25 = int_to_ptr.vmem [resolvable:$true] %s165_s25 }
  0x33   : > { %s2426_s5 = scalar_lea.sflag [#allocation3], %s154_s23  ;;  %s2153_s6 = scalar_lea.hbm %s2418_s4, 4096 }
  0x34   : > { %p2154_p13 = scmp.ne.s32.totalorder %s2418_s4, %s2153_s6  ;;  %p2155_p0 = pneg %p2420_p11 }
  0x35   : > { %s2158_s11 = scalar_lea.hbm %s2818_s0, 8192  ;;  %p2159_p7 = scmp.lt.u32.totalorder %s2418_s4, %s2818_s0 }
  0x36   : > { %p2156_p3 = pnand %p2155_p0, %p2154_p13  ;;  %p2160_p9 = scmp.lt.u32.totalorder %s2158_s11, %s2153_s6 }
  0x37   : > { %p2162_p2 = scmp.lt.u32.totalorder %s2153_s6, %s2418_s4 }
  0x38   : > { %p2157_p5 = pneg %p2156_p3  ;;  %p2161_p1 = por %p2160_p9, %p2159_p7 }
  0x3a   : > { %p2163_p4 = por %p2162_p2, %p2161_p1 }
  0x3c   : > { %p2164_p6 = pnand %p2163_p4, %p2157_p5 }
  0x3e   : > { %2167 = shalt.err (!%p2164_p6)
}
  0x3f   : > { %s2168_s23 = scalar_lea.vmem %s2424_s25, 4096  ;;  %s2290_s29 = smov [#allocation2]  }
  0x40   : > { %p2169_p8 = scmp.ne.s32.totalorder %s2424_s25, %s2168_s23  ;;  %s2173_s30 = sshll.u32 %s2290_s29, 4  ;;  %s2174_s30 = int_to_ptr.vmem [resolvable:$false] %s2173_s30 }
  0x41   : > { %s2175_s22 = scalar_lea.vmem %s2174_s30, 8192  ;;  %p2176_p3 = scmp.lt.s32.totalorder %s2424_s25, %s2174_s30 }
  0x42   : > { %p2171_p10 = pnand %p2169_p8, %p2155_p0  ;;  %p2177_p7 = scmp.lt.s32.totalorder %s2175_s22, %s2168_s23 }
  0x44   : > { %p2172_p13 = pneg %p2171_p10  ;;  %p2178_p9 = por %p2177_p7, %p2176_p3 }
  0x46   : > { %p2179_p1 = pnand %p2178_p9, %p2172_p13 }
  0x48   : > { %2182 = shalt.err (!%p2179_p1)
}
  0x49   : > { %2036 = dma.hbm_to_vmem [thread:$0]  (!%p2420_p11), %s2418_s4, 4096, %s2424_s25, %s2426_s5, %s2288_s8, %s2288_s8, %s2289_s9  }
  0x4a   : > { %p2832_p0 = scmp.ne.s32.totalorder %s2827_s20, 0 }
  0x4b   : > { %s2460_s6 = sand.u32 (!%p2832_p0), 1, %s2277_s13   ;;  %p2833_p5 = scmp.ne.s32.totalorder (!%p2832_p0), %s2825_s18, 0 }
  0x4c   : > { %177 = sbr.rel (%p2832_p0) target bundleno = 502 (0x1f6), region = 28  ;;  %s1511_s7 = sshll.u32 (!%p2832_p0), %s2460_s6, 8 }
  0x4d   : > { %s180_s10 = scalar_lea.sflag (!%p2832_p0), [#allocation3], %s2460_s6  ;;  %s2466_s26 = scalar_lea.vmem (!%p2832_p0), [#allocation2], %s1511_s7 }
  0x53   : > { %2256 = dma.done.wait (%p2833_p5), %s180_s10, 4096  }
  0x54   : > { %2258 = vsyncadd (%p2833_p5), %s180_s10, 4294963200  ;;  %p2834_p11 = scmp.eq.s32.totalorder %s2336_s16, 0 }
  0x56   : > { %2260 = dma.done.wait (%p2834_p11), [#allocation6], 1024   ;;  %p2835_p2 = pmov %p2834_p11 }
  0x57   : > { %v2085_v0 = vld [vmem:[#allocation5] sm:$0xff]   ;;  %v2086_v1 = vld [vmem:[#allocation5 + $0x8] sm:$0xff]   ;;  %v2087_v2 = vld [vmem:[#allocation5 + $0x10] sm:$0xff]   ;;  %s2522_s18 = scalar_lea.vmem [#allocation7], %s1511_s7  ;;  %s1691_s20 = sshll.u32 %s2336_s16, 12 }
  0x58   : > { %2262 = vsyncadd (%p2835_p2), [#allocation6], 4294966272  ;;  %1923 = vmatprep.subr.bf16.mxu0 %v2085_v0  ;;  %2003 = vmatprep.subr.bf16.mxu1 %v2085_v0  ;;  %v2088_v3 = vld [vmem:[#allocation5 + $0x18] sm:$0xff]   ;;  %v2093_v4 = vld [vmem:[%s2466_s26] sm:$0xff]   ;;  %s1375_s8 = sshll.u32 %s2522_s18, 4  ;;  %s2639_s25 = scalar_lea.hbm %s2820_s2, %s1691_s20  ;;  %s2641_s8 = int_to_ptr.vmem [resolvable:$true] %s1375_s8 }
  0x59   : > { %1924 = vmatpush3.bf16.msra.mxu0 %v2085_v0  ;;  %2011 = vmatpush3.bf16.msra.mxu1 %v2085_v0  ;;  %v2089_v5 = vld [vmem:[#allocation5 + $0x20] sm:$0xff]   ;;  %v2090_v6 = vld [vmem:[#allocation5 + $0x28] sm:$0xff]   ;;  %v2091_v7 = vld [vmem:[#allocation5 + $0x30] sm:$0xff]   ;;  %s1357_s5 = scalar_lea.sflag [#allocation4], %s2460_s6  ;;  %s2183_s11 = scalar_lea.vmem %s2641_s8, 4096 }
  0x5a   : > { %1925 = vmatprep.subr.bf16.mxu0 %v2086_v1  ;;  %2004 = vmatprep.subr.bf16.mxu1 %v2086_v1  ;;  %v2092_v8 = vld [vmem:[#allocation5 + $0x38] sm:$0xff]   ;;  %v2109_v9 = vld [vmem:[%s2466_s26 + $0x80] sm:$0xff]   ;;  %v2094_v10 = vld [vmem:[%s2466_s26 + $0x8] sm:$0xff]   ;;  %p2184_p4 = scmp.ne.s32.totalorder %s2641_s8, %s2183_s11  ;;  %s2291_s27 = smov [#allocation7]  }
  0x5b   : > { %1939 = vmatprep.mubr.bf16.mxu0 %v2093_v4  ;;  %1971 = vmatprep.mubr.bf16.mxu1 %v2109_v9  ;;  %v2095_v11 = vld [vmem:[%s2466_s26 + $0x10] sm:$0xff]   ;;  %v2110_v12 = vld [vmem:[%s2466_s26 + $0x88] sm:$0xff]   ;;  %v2096_v14 = vld [vmem:[%s2466_s26 + $0x18] sm:$0xff]   ;;  %s2187_s28 = sshll.u32 %s2291_s27, 4  ;;  %s2188_s28 = int_to_ptr.vmem [resolvable:$false] %s2187_s28 }
  0x5c   : > { %v2111_v13 = vld [vmem:[%s2466_s26 + $0x90] sm:$0xff]   ;;  %v2097_v15 = vld [vmem:[%s2466_s26 + $0x20] sm:$0xff]   ;;  %v2112_v16 = vld [vmem:[%s2466_s26 + $0x98] sm:$0xff]   ;;  %p2185_p6 = pnand %p2184_p4, %p2409_p12  ;;  %s2189_s23 = scalar_lea.vmem %s2188_s28, 8192 }
  0x5d   : > { %1926 = vmatpush3.bf16.msra.mxu0 %v2086_v1  ;;  %2012 = vmatpush3.bf16.msra.mxu1 %v2086_v1  ;;  %v2113_v17 = vld [vmem:[%s2466_s26 + $0xa0] sm:$0xff]   ;;  %v2098_v18 = vld [vmem:[%s2466_s26 + $0x28] sm:$0xff]   ;;  %v2099_v20 = vld [vmem:[%s2466_s26 + $0x30] sm:$0xff]   ;;  %p2190_p10 = scmp.lt.s32.totalorder %s2641_s8, %s2188_s28  ;;  %p2191_p13 = scmp.lt.s32.totalorder %s2189_s23, %s2183_s11 }
  0x5e   : > { %1927 = vmatprep.subr.bf16.mxu0 %v2087_v2  ;;  %2005 = vmatprep.subr.bf16.mxu1 %v2087_v2  ;;  %v2114_v19 = vld [vmem:[%s2466_s26 + $0xa8] sm:$0xff]   ;;  %v2115_v21 = vld [vmem:[%s2466_s26 + $0xb0] sm:$0xff]   ;;  %v2100_v22 = vld [vmem:[%s2466_s26 + $0x38] sm:$0xff]   ;;  %p2186_p8 = pneg %p2185_p6 }
  0x5f   : > { %v2116_v23 = vld [vmem:[%s2466_s26 + $0xb8] sm:$0xff]   ;;  %v2101_v24 = vld [vmem:[%s2466_s26 + $0x40] sm:$0xff]   ;;  %v2102_v26 = vld [vmem:[%s2466_s26 + $0x48] sm:$0xff]   ;;  %p2192_p3 = por %p2191_p13, %p2190_p10 }
  0x60   : > { %v2117_v25 = vld [vmem:[%s2466_s26 + $0xc0] sm:$0xff]   ;;  %v2118_v27 = vld [vmem:[%s2466_s26 + $0xc8] sm:$0xff]   ;;  %v2103_v28 = vld [vmem:[%s2466_s26 + $0x50] sm:$0xff]  }
  0x61   : > { %1928 = vmatpush3.bf16.msra.mxu0 %v2087_v2  ;;  %2013 = vmatpush3.bf16.msra.mxu1 %v2087_v2  ;;  %v2119_v29 = vld [vmem:[%s2466_s26 + $0xd0] sm:$0xff]   ;;  %v2104_v30 = vld [vmem:[%s2466_s26 + $0x58] sm:$0xff]   ;;  %v2105_v32 = vld [vmem:[%s2466_s26 + $0x60] sm:$0xff]   ;;  %p2193_p7 = pnand %p2192_p3, %p2186_p8 }
  0x62   : > { %1929 = vmatprep.subr.bf16.mxu0 %v2088_v3  ;;  %2006 = vmatprep.subr.bf16.mxu1 %v2088_v3  ;;  %v2120_v31 = vld [vmem:[%s2466_s26 + $0xd8] sm:$0xff]   ;;  %v2121_v33 = vld [vmem:[%s2466_s26 + $0xe0] sm:$0xff]   ;;  %v2106_v34 = vld [vmem:[%s2466_s26 + $0x68] sm:$0xff]  }
  0x63   : > { %v2122_v35 = vld [vmem:[%s2466_s26 + $0xe8] sm:$0xff]   ;;  %v2107_v36 = vld [vmem:[%s2466_s26 + $0x70] sm:$0xff]   ;;  %v2108_v38 = vld [vmem:[%s2466_s26 + $0x78] sm:$0xff]  }
  0x64   : > { %v2123_v37 = vld [vmem:[%s2466_s26 + $0xf0] sm:$0xff]   ;;  %v2124_v39 = vld [vmem:[%s2466_s26 + $0xf8] sm:$0xff]  }
  0x65   : > { %1930 = vmatpush3.bf16.msra.mxu0 %v2088_v3  ;;  %2014 = vmatpush3.bf16.msra.mxu1 %v2088_v3 }
  0x66   : > { %1931 = vmatprep.subr.bf16.mxu0 %v2089_v5  ;;  %2007 = vmatprep.subr.bf16.mxu1 %v2089_v5 }
  0x69   : > { %1932 = vmatpush3.bf16.msra.mxu0 %v2089_v5  ;;  %2015 = vmatpush3.bf16.msra.mxu1 %v2089_v5 }
  0x6a   : > { %1933 = vmatprep.subr.bf16.mxu0 %v2090_v6  ;;  %2008 = vmatprep.subr.bf16.mxu1 %v2090_v6 }
  0x6d   : > { %1934 = vmatpush3.bf16.msra.mxu0 %v2090_v6  ;;  %2016 = vmatpush3.bf16.msra.mxu1 %v2090_v6 }
  0x6e   : > { %1935 = vmatprep.subr.bf16.mxu0 %v2091_v7  ;;  %2009 = vmatprep.subr.bf16.mxu1 %v2091_v7 }
  0x71   : > { %1936 = vmatpush3.bf16.msra.mxu0 %v2091_v7  ;;  %2017 = vmatpush3.bf16.msra.mxu1 %v2091_v7 }
  0x72   : > { %1937 = vmatprep.subr.bf16.mxu0 %v2092_v8  ;;  %2010 = vmatprep.subr.bf16.mxu1 %v2092_v8 }
  0x75   : > { %1938 = vmatpush3.bf16.msra.mxu0 %v2092_v8  ;;  %2018 = vmatpush3.bf16.msra.mxu1 %v2092_v8 }
  0x78   : > { %1940 = vmatmul.mubr.bf16.vlgmr.msra.gmra.mrb[0].mxu0 %v2094_v10  ;;  %1972 = vmatmul.mubr.bf16.vlgmr.msra.gmra.mrb[0].mxu1 %v2110_v12 }
  0x79   : > { %1943 = vmatprep.mubr.bf16.mxu0 %v2095_v11  ;;  %1975 = vmatprep.mubr.bf16.mxu1 %v2111_v13 }
  0x80   : > { %1944 = vmatmul.mubr.bf16.gmra.mrb[4].mxu0 %v2096_v14  ;;  %1976 = vmatmul.mubr.bf16.gmra.mrb[4].mxu1 %v2112_v16 }
  0x81   : > { %1947 = vmatprep.mubr.bf16.mxu0 %v2097_v15  ;;  %1979 = vmatprep.mubr.bf16.mxu1 %v2113_v17 }
  0x88   : > { %1948 = vmatmul.mubr.bf16.gmra.mrb[8].mxu0 %v2098_v18  ;;  %1980 = vmatmul.mubr.bf16.gmra.mrb[8].mxu1 %v2114_v19 }
  0x89   : > { %1951 = vmatprep.mubr.bf16.mxu0 %v2099_v20  ;;  %1983 = vmatprep.mubr.bf16.mxu1 %v2115_v21 }
  0x90   : > { %1952 = vmatmul.mubr.bf16.gmra.mrb[12].mxu0 %v2100_v22  ;;  %1984 = vmatmul.mubr.bf16.gmra.mrb[12].mxu1 %v2116_v23 }
  0x91   : > { %1955 = vmatprep.mubr.bf16.mxu0 %v2101_v24  ;;  %1987 = vmatprep.mubr.bf16.mxu1 %v2117_v25 }
  0x98   : > { %1956 = vmatmul.mubr.bf16.gmra.mrb[16].mxu0 %v2102_v26  ;;  %1988 = vmatmul.mubr.bf16.gmra.mrb[16].mxu1 %v2118_v27 }
  0x99   : > { %1959 = vmatprep.mubr.bf16.mxu0 %v2103_v28  ;;  %1991 = vmatprep.mubr.bf16.mxu1 %v2119_v29 }
  0xa0   : > { %1960 = vmatmul.mubr.bf16.gmra.mrb[20].mxu0 %v2104_v30  ;;  %1992 = vmatmul.mubr.bf16.gmra.mrb[20].mxu1 %v2120_v31 }
  0xa1   : > { %1963 = vmatprep.mubr.bf16.mxu0 %v2105_v32  ;;  %1995 = vmatprep.mubr.bf16.mxu1 %v2121_v33 }
  0xa8   : > { %1964 = vmatmul.mubr.bf16.gmra.mrb[24].mxu0 %v2106_v34  ;;  %1996 = vmatmul.mubr.bf16.gmra.mrb[24].mxu1 %v2122_v35 }
  0xa9   : > { %1967 = vmatprep.mubr.bf16.mxu0 %v2107_v36  ;;  %1999 = vmatprep.mubr.bf16.mxu1 %v2123_v37 }
  0xb0   : > { %1968 = vmatmul.mubr.bf16.gmra.mrb[28].mxu0 %v2108_v38  ;;  %2000 = vmatmul.mubr.bf16.gmra.mrb[28].mxu1 %v2124_v39 }
 0x14b   : > { %v1941_v40 = vpop.f32.mrb[0].mxu0  ;;  %v2508_v41 = vpop.f32.mrb[0].mxu1 }
 0x14c   : > { %v572_v42 = vpop.f32.mrb[1].mxu0  ;;  %v2510_v43 = vpop.f32.mrb[1].mxu1  ;;  %v1218_v55 = vmul.f32 %v1941_v40, %v1941_v40 }
 0x14d   : > { %v1942_v44 = vpop.f32.mrb[2].mxu0  ;;  %v2512_v45 = vpop.f32.mrb[2].mxu1  ;;  %v1216_v46 = vmul.f32 %v572_v42, %v572_v42 }
 0x14e   : > { %v1700_v47 = vpack.c.bf16 %v1942_v44, %v1941_v40  ;;  %v575_v48 = vpop.f32.mrb[3].mxu0  ;;  %v1780_v49 = vpack.c.bf16 %v2512_v45, %v2508_v41  ;;  %v2516_v50 = vpop.f32.mrb[3].mxu1  ;;  %v1219_v58 = vmul.f32 %v1942_v44, %v1942_v44 }
 0x14f   : > { %v1695_v51 = vpack.c.bf16 %v575_v48, %v572_v42  ;;  %v1147_v52 = vadd.f32 %v575_v48, %v572_v42  ;;  %v1217_v53 = vmul.f32 %v575_v48, %v575_v48  ;;  %v1775_v54 = vpack.c.bf16 %v2516_v50, %v2510_v43 }
 0x150   : > { %1852 = vst [vmem:[%s2522_s18 + $0x8] sm:$0xff] %v1700_v47   ;;  %1868 = vst [vmem:[%s2522_s18 + $0x88] sm:$0xff] %v1780_v49  }
 0x151   : > { %1696 = vst [vmem:[%s2522_s18] sm:$0xff] %v1695_v51   ;;  %v1148_v56 = vadd.f32 %v1941_v40, %v1147_v52  ;;  %v1280_v57 = vadd.f32 %v1217_v53, %v1216_v46  ;;  %1867 = vst [vmem:[%s2522_s18 + $0x80] sm:$0xff] %v1775_v54  }
 0x153   : > { %v1281_v59 = vadd.f32 %v1280_v57, %v1218_v55  ;;  %v1945_v60 = vpop.f32.mrb[4].mxu0  ;;  %v1149_v61 = vadd.f32 %v1942_v44, %v1148_v56  ;;  %v2528_v62 = vpop.f32.mrb[4].mxu1 }
 0x154   : > { %v588_v63 = vpop.f32.mrb[5].mxu0  ;;  %v2530_v0 = vpop.f32.mrb[5].mxu1  ;;  %v1222_v15 = vmul.f32 %v1945_v60, %v1945_v60 }
 0x155   : > { %v1150_v1 = vadd.f32 %v1149_v61, %v588_v63  ;;  %v1220_v2 = vmul.f32 %v588_v63, %v588_v63  ;;  %v1282_v3 = vadd.f32 %v1281_v59, %v1219_v58  ;;  %v1946_v4 = vpop.f32.mrb[6].mxu0  ;;  %v2532_v5 = vpop.f32.mrb[6].mxu1 }
 0x156   : > { %v1710_v6 = vpack.c.bf16 %v1946_v4, %v1945_v60  ;;  %v591_v7 = vpop.f32.mrb[7].mxu0  ;;  %v1790_v8 = vpack.c.bf16 %v2532_v5, %v2528_v62  ;;  %v2536_v9 = vpop.f32.mrb[7].mxu1  ;;  %v1223_v18 = vmul.f32 %v1946_v4, %v1946_v4 }
 0x157   : > { %v1283_v10 = vadd.f32 %v1282_v3, %v1220_v2  ;;  %v1705_v11 = vpack.c.bf16 %v591_v7, %v588_v63  ;;  %v1151_v12 = vadd.f32 %v1150_v1, %v591_v7  ;;  %v1221_v13 = vmul.f32 %v591_v7, %v591_v7 }
 0x158   : > { %1854 = vst [vmem:[%s2522_s18 + $0x18] sm:$0xff] %v1710_v6   ;;  %1870 = vst [vmem:[%s2522_s18 + $0x98] sm:$0xff] %v1790_v8   ;;  %v1785_v14 = vpack.c.bf16 %v2536_v9, %v2530_v0 }
 0x159   : > { %1853 = vst [vmem:[%s2522_s18 + $0x10] sm:$0xff] %v1705_v11   ;;  %v1152_v16 = vadd.f32 %v1945_v60, %v1151_v12  ;;  %v1284_v17 = vadd.f32 %v1283_v10, %v1221_v13 }
 0x15a   : > { %1869 = vst [vmem:[%s2522_s18 + $0x90] sm:$0xff] %v1785_v14  }
 0x15b   : > { %v1285_v19 = vadd.f32 %v1284_v17, %v1222_v15  ;;  %v1949_v20 = vpop.f32.mrb[8].mxu0  ;;  %v1153_v21 = vadd.f32 %v1946_v4, %v1152_v16  ;;  %v2544_v22 = vpop.f32.mrb[8].mxu1 }
 0x15c   : > { %v604_v23 = vpop.f32.mrb[9].mxu0  ;;  %v2546_v24 = vpop.f32.mrb[9].mxu1  ;;  %v1226_v39 = vmul.f32 %v1949_v20, %v1949_v20 }
 0x15d   : > { %v1154_v25 = vadd.f32 %v1153_v21, %v604_v23  ;;  %v1224_v26 = vmul.f32 %v604_v23, %v604_v23  ;;  %v1286_v27 = vadd.f32 %v1285_v19, %v1223_v18  ;;  %v1950_v28 = vpop.f32.mrb[10].mxu0  ;;  %v2548_v29 = vpop.f32.mrb[10].mxu1 }
 0x15e   : > { %v1720_v30 = vpack.c.bf16 %v1950_v28, %v1949_v20  ;;  %v607_v31 = vpop.f32.mrb[11].mxu0  ;;  %v1800_v32 = vpack.c.bf16 %v2548_v29, %v2544_v22  ;;  %v2552_v33 = vpop.f32.mrb[11].mxu1  ;;  %v1227_v44 = vmul.f32 %v1950_v28, %v1950_v28 }
 0x15f   : > { %v1287_v34 = vadd.f32 %v1286_v27, %v1224_v26  ;;  %v1715_v35 = vpack.c.bf16 %v607_v31, %v604_v23  ;;  %v1155_v36 = vadd.f32 %v1154_v25, %v607_v31  ;;  %v1225_v37 = vmul.f32 %v607_v31, %v607_v31 }
 0x160   : > { %1856 = vst [vmem:[%s2522_s18 + $0x28] sm:$0xff] %v1720_v30   ;;  %1872 = vst [vmem:[%s2522_s18 + $0xa8] sm:$0xff] %v1800_v32   ;;  %v1795_v38 = vpack.c.bf16 %v2552_v33, %v2546_v24 }
 0x161   : > { %1855 = vst [vmem:[%s2522_s18 + $0x20] sm:$0xff] %v1715_v35   ;;  %v1156_v40 = vadd.f32 %v1949_v20, %v1155_v36  ;;  %v1288_v42 = vadd.f32 %v1287_v34, %v1225_v37 }
 0x162   : > { %1871 = vst [vmem:[%s2522_s18 + $0xa0] sm:$0xff] %v1795_v38  }
 0x163   : > { %v1289_v46 = vadd.f32 %v1288_v42, %v1226_v39  ;;  %v1953_v47 = vpop.f32.mrb[12].mxu0  ;;  %v1157_v48 = vadd.f32 %v1950_v28, %v1156_v40  ;;  %v2560_v49 = vpop.f32.mrb[12].mxu1 }
 0x164   : > { %v620_v51 = vpop.f32.mrb[13].mxu0  ;;  %v2562_v52 = vpop.f32.mrb[13].mxu1  ;;  %v1230_v6 = vmul.f32 %v1953_v47, %v1953_v47 }
 0x165   : > { %v1158_v53 = vadd.f32 %v1157_v48, %v620_v51  ;;  %v1228_v54 = vmul.f32 %v620_v51, %v620_v51  ;;  %v1290_v55 = vadd.f32 %v1289_v46, %v1227_v44  ;;  %v1954_v56 = vpop.f32.mrb[14].mxu0  ;;  %v2564_v57 = vpop.f32.mrb[14].mxu1 }
 0x166   : > { %v1730_v58 = vpack.c.bf16 %v1954_v56, %v1953_v47  ;;  %v623_v59 = vpop.f32.mrb[15].mxu0  ;;  %v1810_v60 = vpack.c.bf16 %v2564_v57, %v2560_v49  ;;  %v2568_v61 = vpop.f32.mrb[15].mxu1  ;;  %v1231_v10 = vmul.f32 %v1954_v56, %v1954_v56 }
 0x167   : > { %v1291_v63 = vadd.f32 %v1290_v55, %v1228_v54  ;;  %v1725_v1 = vpack.c.bf16 %v623_v59, %v620_v51  ;;  %v1159_v2 = vadd.f32 %v1158_v53, %v623_v59  ;;  %v1229_v3 = vmul.f32 %v623_v59, %v623_v59 }
 0x168   : > { %1858 = vst [vmem:[%s2522_s18 + $0x38] sm:$0xff] %v1730_v58   ;;  %1874 = vst [vmem:[%s2522_s18 + $0xb8] sm:$0xff] %v1810_v60   ;;  %v1805_v4 = vpack.c.bf16 %v2568_v61, %v2562_v52 }
 0x169   : > { %1857 = vst [vmem:[%s2522_s18 + $0x30] sm:$0xff] %v1725_v1   ;;  %v1160_v7 = vadd.f32 %v1953_v47, %v1159_v2  ;;  %v1292_v8 = vadd.f32 %v1291_v63, %v1229_v3 }
 0x16a   : > { %1873 = vst [vmem:[%s2522_s18 + $0xb0] sm:$0xff] %v1805_v4  }
 0x16b   : > { %v1293_v11 = vadd.f32 %v1292_v8, %v1230_v6  ;;  %v1957_v12 = vpop.f32.mrb[16].mxu0  ;;  %v1161_v13 = vadd.f32 %v1954_v56, %v1160_v7  ;;  %v2576_v14 = vpop.f32.mrb[16].mxu1 }
 0x16c   : > { %v636_v15 = vpop.f32.mrb[17].mxu0  ;;  %v2578_v16 = vpop.f32.mrb[17].mxu1  ;;  %v1234_v35 = vmul.f32 %v1957_v12, %v1957_v12 }
 0x16d   : > { %v1162_v17 = vadd.f32 %v1161_v13, %v636_v15  ;;  %v1232_v18 = vmul.f32 %v636_v15, %v636_v15  ;;  %v1294_v19 = vadd.f32 %v1293_v11, %v1231_v10  ;;  %v1958_v20 = vpop.f32.mrb[18].mxu0  ;;  %v2580_v21 = vpop.f32.mrb[18].mxu1 }
 0x16e   : > { %v1740_v23 = vpack.c.bf16 %v1958_v20, %v1957_v12  ;;  %v639_v25 = vpop.f32.mrb[19].mxu0  ;;  %v1820_v26 = vpack.c.bf16 %v2580_v21, %v2576_v14  ;;  %v2584_v27 = vpop.f32.mrb[19].mxu1  ;;  %v1235_v38 = vmul.f32 %v1958_v20, %v1958_v20 }
 0x16f   : > { %v1295_v28 = vadd.f32 %v1294_v19, %v1232_v18  ;;  %v1735_v30 = vpack.c.bf16 %v639_v25, %v636_v15  ;;  %v1163_v31 = vadd.f32 %v1162_v17, %v639_v25  ;;  %v1233_v32 = vmul.f32 %v639_v25, %v639_v25 }
 0x170   : > { %1860 = vst [vmem:[%s2522_s18 + $0x48] sm:$0xff] %v1740_v23   ;;  %1876 = vst [vmem:[%s2522_s18 + $0xc8] sm:$0xff] %v1820_v26   ;;  %v1815_v34 = vpack.c.bf16 %v2584_v27, %v2578_v16 }
 0x171   : > { %1859 = vst [vmem:[%s2522_s18 + $0x40] sm:$0xff] %v1735_v30   ;;  %v1164_v36 = vadd.f32 %v1957_v12, %v1163_v31  ;;  %v1296_v37 = vadd.f32 %v1295_v28, %v1233_v32 }
 0x172   : > { %1875 = vst [vmem:[%s2522_s18 + $0xc0] sm:$0xff] %v1815_v34  }
 0x173   : > { %v1297_v39 = vadd.f32 %v1296_v37, %v1234_v35  ;;  %v1961_v40 = vpop.f32.mrb[20].mxu0  ;;  %v1165_v42 = vadd.f32 %v1958_v20, %v1164_v36  ;;  %v2592_v44 = vpop.f32.mrb[20].mxu1 }
 0x174   : > { %v652_v46 = vpop.f32.mrb[21].mxu0  ;;  %v2594_v47 = vpop.f32.mrb[21].mxu1  ;;  %v1238_v6 = vmul.f32 %v1961_v40, %v1961_v40 }
 0x175   : > { %v1166_v48 = vadd.f32 %v1165_v42, %v652_v46  ;;  %v1236_v51 = vmul.f32 %v652_v46, %v652_v46  ;;  %v1298_v53 = vadd.f32 %v1297_v39, %v1235_v38  ;;  %v1962_v54 = vpop.f32.mrb[22].mxu0  ;;  %v2596_v55 = vpop.f32.mrb[22].mxu1 }
 0x176   : > { %v1750_v56 = vpack.c.bf16 %v1962_v54, %v1961_v40  ;;  %v655_v58 = vpop.f32.mrb[23].mxu0  ;;  %v1830_v59 = vpack.c.bf16 %v2596_v55, %v2592_v44  ;;  %v2600_v60 = vpop.f32.mrb[23].mxu1  ;;  %v1239_v10 = vmul.f32 %v1962_v54, %v1962_v54 }
 0x177   : > { %v1299_v63 = vadd.f32 %v1298_v53, %v1236_v51  ;;  %v1745_v1 = vpack.c.bf16 %v655_v58, %v652_v46  ;;  %v1167_v2 = vadd.f32 %v1166_v48, %v655_v58  ;;  %v1237_v3 = vmul.f32 %v655_v58, %v655_v58 }
 0x178   : > { %1862 = vst [vmem:[%s2522_s18 + $0x58] sm:$0xff] %v1750_v56   ;;  %1878 = vst [vmem:[%s2522_s18 + $0xd8] sm:$0xff] %v1830_v59   ;;  %v1825_v4 = vpack.c.bf16 %v2600_v60, %v2594_v47 }
 0x179   : > { %1861 = vst [vmem:[%s2522_s18 + $0x50] sm:$0xff] %v1745_v1   ;;  %v1168_v7 = vadd.f32 %v1961_v40, %v1167_v2  ;;  %v1300_v8 = vadd.f32 %v1299_v63, %v1237_v3 }
 0x17a   : > { %1877 = vst [vmem:[%s2522_s18 + $0xd0] sm:$0xff] %v1825_v4  }
 0x17b   : > { %v1301_v11 = vadd.f32 %v1300_v8, %v1238_v6  ;;  %v1965_v12 = vpop.f32.mrb[24].mxu0  ;;  %v1169_v13 = vadd.f32 %v1962_v54, %v1168_v7  ;;  %v2608_v15 = vpop.f32.mrb[24].mxu1 }
 0x17c   : > { %v668_v17 = vpop.f32.mrb[25].mxu0  ;;  %v2610_v18 = vpop.f32.mrb[25].mxu1  ;;  %v1242_v39 = vmul.f32 %v1965_v12, %v1965_v12 }
 0x17d   : > { %v1170_v19 = vadd.f32 %v1169_v13, %v668_v17  ;;  %v1240_v20 = vmul.f32 %v668_v17, %v668_v17  ;;  %v1302_v23 = vadd.f32 %v1301_v11, %v1239_v10  ;;  %v1966_v25 = vpop.f32.mrb[26].mxu0  ;;  %v2612_v26 = vpop.f32.mrb[26].mxu1 }
 0x17e   : > { %v1760_v28 = vpack.c.bf16 %v1966_v25, %v1965_v12  ;;  %v671_v30 = vpop.f32.mrb[27].mxu0  ;;  %v1840_v31 = vpack.c.bf16 %v2612_v26, %v2608_v15  ;;  %v2616_v32 = vpop.f32.mrb[27].mxu1  ;;  %v1243_v46 = vmul.f32 %v1966_v25, %v1966_v25 }
 0x17f   : > { %v1303_v34 = vadd.f32 %v1302_v23, %v1240_v20  ;;  %v1755_v35 = vpack.c.bf16 %v671_v30, %v668_v17  ;;  %v1171_v36 = vadd.f32 %v1170_v19, %v671_v30  ;;  %v1241_v37 = vmul.f32 %v671_v30, %v671_v30 }
 0x180   : > { %1864 = vst [vmem:[%s2522_s18 + $0x68] sm:$0xff] %v1760_v28   ;;  %1880 = vst [vmem:[%s2522_s18 + $0xe8] sm:$0xff] %v1840_v31   ;;  %v1835_v38 = vpack.c.bf16 %v2616_v32, %v2610_v18  ;;  %v1248_v31 = vmul.f32 %v2510_v43, %v2510_v43 }
 0x181   : > { %1863 = vst [vmem:[%s2522_s18 + $0x60] sm:$0xff] %v1755_v35   ;;  %v1172_v40 = vadd.f32 %v1965_v12, %v1171_v36  ;;  %v1304_v42 = vadd.f32 %v1303_v34, %v1241_v37 }
 0x182   : > { %1879 = vst [vmem:[%s2522_s18 + $0xe0] sm:$0xff] %v1835_v38  }
 0x183   : > { %v1305_v48 = vadd.f32 %v1304_v42, %v1242_v39  ;;  %v1969_v51 = vpop.f32.mrb[28].mxu0  ;;  %v1173_v53 = vadd.f32 %v1966_v25, %v1172_v40  ;;  %v2624_v54 = vpop.f32.mrb[28].mxu1 }
 0x184   : > { %v684_v56 = vpop.f32.mrb[29].mxu0  ;;  %v2626_v58 = vpop.f32.mrb[29].mxu1  ;;  %v1246_v19 = vmul.f32 %v1969_v51, %v1969_v51 }
 0x185   : > { %v1174_v59 = vadd.f32 %v1173_v53, %v684_v56  ;;  %v1244_v63 = vmul.f32 %v684_v56, %v684_v56  ;;  %v1306_v1 = vadd.f32 %v1305_v48, %v1243_v46  ;;  %v1970_v2 = vpop.f32.mrb[30].mxu0  ;;  %v2630_v3 = vpop.f32.mrb[30].mxu1 }
 0x186   : > { %v1770_v4 = vpack.c.bf16 %v1970_v2, %v1969_v51  ;;  %v687_v6 = vpop.f32.mrb[31].mxu0  ;;  %v1850_v7 = vpack.c.bf16 %v2630_v3, %v2624_v54  ;;  %v2634_v8 = vpop.f32.mrb[31].mxu1  ;;  %v1247_v25 = vmul.f32 %v1970_v2, %v1970_v2 }
 0x187   : > { %v1307_v10 = vadd.f32 %v1306_v1, %v1244_v63  ;;  %v1765_v11 = vpack.c.bf16 %v687_v6, %v684_v56  ;;  %v1175_v12 = vadd.f32 %v1174_v59, %v687_v6  ;;  %v1245_v13 = vmul.f32 %v687_v6, %v687_v6 }
 0x188   : > { %1866 = vst [vmem:[%s2522_s18 + $0x78] sm:$0xff] %v1770_v4   ;;  %1882 = vst [vmem:[%s2522_s18 + $0xf8] sm:$0xff] %v1850_v7   ;;  %v1845_v17 = vpack.c.bf16 %v2634_v8, %v2626_v58 }
 0x189   : > { %1865 = vst [vmem:[%s2522_s18 + $0x70] sm:$0xff] %v1765_v11   ;;  %v1176_v20 = vadd.f32 %v1969_v51, %v1175_v12  ;;  %v1308_v23 = vadd.f32 %v1307_v10, %v1245_v13 }
 0x18a   : > { %1881 = vst [vmem:[%s2522_s18 + $0xf0] sm:$0xff] %v1845_v17  }
 0x18b   : > { %v1309_v28 = vadd.f32 %v1308_v23, %v1246_v19  ;;  %v1177_v30 = vadd.f32 %v1970_v2, %v1176_v20 }
 0x18c   : > { %2196 = shalt.err (!%p2193_p7)
}
 0x18d   : > { %s2197_s29 = scalar_lea.hbm %s2639_s25, 4096  ;;  %s2201_s7 = scalar_lea.hbm %s2820_s2, 8192 }
 0x18e   : > { %p2198_p9 = scmp.ne.s32.totalorder %s2639_s25, %s2197_s29  ;;  %p2202_p5 = scmp.lt.u32.totalorder %s2639_s25, %s2820_s2 }
 0x18f   : > { %p2203_p11 = scmp.lt.u32.totalorder %s2201_s7, %s2197_s29  ;;  %p2205_p4 = scmp.lt.u32.totalorder %s2197_s29, %s2639_s25 }
 0x190   : > { %p2199_p1 = pnand %p2198_p9, %p2409_p12 }
 0x191   : > { %p2204_p2 = por %p2203_p11, %p2202_p5 }
 0x192   : > { %p2200_p0 = pneg %p2199_p1 }
 0x193   : > { %p2206_p6 = por %p2205_p4, %p2204_p2 }
 0x195   : > { %p2207_p8 = pnand %p2206_p6, %p2200_p0 }
 0x197   : > { %2210 = shalt.err (!%p2207_p8)
}
 0x198   : > { %s2292_s18 = smov 64   ;;  %s2293_s20 = smov 4   ;;  %v1178_v34 = vadd.f32 %v1177_v30, %v2510_v43  ;;  %v1310_v35 = vadd.f32 %v1309_v28, %v1247_v25  ;;  %v1249_v38 = vmul.f32 %v2516_v50, %v2516_v50  ;;  %v1250_v39 = vmul.f32 %v2508_v41, %v2508_v41 }
 0x199   : > { %2025 = dma.vmem_to_hbm [thread:$0]  (%p2409_p12), %s2641_s8, 4096, %s2639_s25, %s1357_s5, %s2292_s18, %s2292_s18, %s2293_s20   ;;  %v1251_v46 = vmul.f32 %v2512_v45, %v2512_v45  ;;  %v1252_v43 = vmul.f32 %v2530_v0, %v2530_v0  ;;  %v1253_v63 = vmul.f32 %v2536_v9, %v2536_v9  ;;  %v1257_v12 = vmul.f32 %v2552_v33, %v2552_v33 }
 0x19a   : > { %v1311_v36 = vadd.f32 %v1310_v35, %v1248_v31  ;;  %v1179_v37 = vadd.f32 %v1178_v34, %v2516_v50  ;;  %v1261_v30 = vmul.f32 %v2568_v61, %v2568_v61  ;;  %s1514_s8 = sshll.u32 %s2460_s6, 3  ;;  %s1623_s9 = sshll.u32 %s2336_s16, 7 }
 0x19b   : > { %s214_s4 = scalar_lea.vmem [#allocation8], %s1514_s8  ;;  %s2774_s27 = scalar_lea.hbm %s2821_s3, %s1623_s9 }
 0x19c   : > { %v1180_v40 = vadd.f32 %v2508_v41, %v1179_v37  ;;  %v1312_v42 = vadd.f32 %v1311_v36, %v1249_v38  ;;  %v1254_v41 = vmul.f32 %v2528_v62, %v2528_v62  ;;  %s1391_s25 = sshll.u32 %s214_s4, 4  ;;  %s1362_s28 = scalar_lea.sflag [#allocation9], %s2460_s6  ;;  %s2776_s25 = int_to_ptr.vmem [resolvable:$true] %s1391_s25 }
 0x19d   : > { %s2211_s16 = scalar_lea.vmem %s2776_s25, 128  ;;  %s2294_s23 = smov [#allocation8]  }
 0x19e   : > { %v1313_v48 = vadd.f32 %v1312_v42, %v1250_v39  ;;  %v1181_v51 = vadd.f32 %v2512_v45, %v1180_v40  ;;  %v1255_v45 = vmul.f32 %v2532_v5, %v2532_v5  ;;  %v1265_v40 = vmul.f32 %v2584_v27, %v2584_v27  ;;  %p2212_p10 = scmp.ne.s32.totalorder %s2776_s25, %s2211_s16  ;;  %s2215_s29 = sshll.u32 %s2294_s23, 4  ;;  %s2216_s29 = int_to_ptr.vmem [resolvable:$false] %s2215_s29 }
 0x19f   : > { %s2217_s30 = scalar_lea.vmem %s2216_s29, 256  ;;  %p2218_p7 = scmp.lt.s32.totalorder %s2776_s25, %s2216_s29 }
 0x1a0   : > { %v1182_v53 = vadd.f32 %v1181_v51, %v2530_v0  ;;  %v1314_v56 = vadd.f32 %v1313_v48, %v1251_v46  ;;  %v1256_v0 = vmul.f32 %v2546_v24, %v2546_v24  ;;  %p2213_p13 = pnand %p2212_p10, %p2409_p12  ;;  %p2219_p9 = scmp.lt.s32.totalorder %s2217_s30, %s2211_s16 }
 0x1a2   : > { %v1315_v59 = vadd.f32 %v1314_v56, %v1252_v43  ;;  %v1183_v50 = vadd.f32 %v1182_v53, %v2536_v9  ;;  %p2214_p3 = pneg %p2213_p13  ;;  %p2220_p1 = por %p2219_p9, %p2218_p7 }
 0x1a4   : > { %v1184_v1 = vadd.f32 %v2528_v62, %v1183_v50  ;;  %v1316_v2 = vadd.f32 %v1315_v59, %v1253_v63  ;;  %v1258_v62 = vmul.f32 %v2544_v22, %v2544_v22  ;;  %v1269_v59 = vmul.f32 %v2600_v60, %v2600_v60  ;;  %p2221_p0 = pnand %p2220_p1, %p2214_p3 }
 0x1a6   : > { %v1317_v4 = vadd.f32 %v1316_v2, %v1254_v41  ;;  %v1185_v6 = vadd.f32 %v2532_v5, %v1184_v1  ;;  %v1259_v5 = vmul.f32 %v2548_v29, %v2548_v29 }
 0x1a8   : > { %v1186_v7 = vadd.f32 %v1185_v6, %v2546_v24  ;;  %v1318_v10 = vadd.f32 %v1317_v4, %v1255_v45  ;;  %v1260_v24 = vmul.f32 %v2562_v52, %v2562_v52  ;;  %v1273_v6 = vmul.f32 %v2616_v32, %v2616_v32 }
 0x1aa   : > { %v1319_v11 = vadd.f32 %v1318_v10, %v1256_v0  ;;  %v1187_v9 = vadd.f32 %v1186_v7, %v2552_v33 }
 0x1ac   : > { %v1188_v13 = vadd.f32 %v2544_v22, %v1187_v9  ;;  %v1320_v17 = vadd.f32 %v1319_v11, %v1257_v12  ;;  %v1262_v22 = vmul.f32 %v2560_v49, %v2560_v49 }
 0x1ae   : > { %v1321_v19 = vadd.f32 %v1320_v17, %v1258_v62  ;;  %v1189_v20 = vadd.f32 %v2548_v29, %v1188_v13  ;;  %v1263_v29 = vmul.f32 %v2564_v57, %v2564_v57  ;;  %v1278_v13 = vmul.f32 %v2624_v54, %v2624_v54 }
 0x1b0   : > { %v1190_v23 = vadd.f32 %v1189_v20, %v2562_v52  ;;  %v1322_v25 = vadd.f32 %v1321_v19, %v1259_v5  ;;  %v1264_v52 = vmul.f32 %v2578_v16, %v2578_v16 }
 0x1b2   : > { %v1323_v28 = vadd.f32 %v1322_v25, %v1260_v24  ;;  %v1191_v33 = vadd.f32 %v1190_v23, %v2568_v61 }
 0x1b4   : > { %v1192_v31 = vadd.f32 %v2560_v49, %v1191_v33  ;;  %v1324_v34 = vadd.f32 %v1323_v28, %v1261_v30  ;;  %v1266_v49 = vmul.f32 %v2576_v14, %v2576_v14  ;;  %v1349_v28 = vlaneseq }
 0x1b6   : > { %v1325_v35 = vadd.f32 %v1324_v34, %v1262_v22  ;;  %v1193_v36 = vadd.f32 %v2564_v57, %v1192_v31  ;;  %v1267_v57 = vmul.f32 %v2580_v21, %v2580_v21  ;;  %v1350_v31 = vshrl.u32 %v1349_v28, 7 }
 0x1b8   : > { %v1194_v37 = vadd.f32 %v1193_v36, %v2578_v16  ;;  %v1326_v38 = vadd.f32 %v1325_v35, %v1263_v29  ;;  %v1268_v16 = vmul.f32 %v2594_v47, %v2594_v47  ;;  %vm1352_vm0 = vcmp.eq.s32.totalorder %v1350_v31, 1 }
 0x1b9   : > { %vm1351_vm1 = vcmp.eq.s32.totalorder %v1350_v31, 0 }
 0x1ba   : > { %v1327_v39 = vadd.f32 %v1326_v38, %v1264_v52  ;;  %v1195_v61 = vadd.f32 %v1194_v37, %v2584_v27 }
 0x1bc   : > { %v1196_v42 = vadd.f32 %v2576_v14, %v1195_v61  ;;  %v1328_v46 = vadd.f32 %v1327_v39, %v1265_v40  ;;  %v1270_v14 = vmul.f32 %v2592_v44, %v2592_v44 }
 0x1be   : > { %v1329_v48 = vadd.f32 %v1328_v46, %v1266_v49  ;;  %v1197_v51 = vadd.f32 %v2580_v21, %v1196_v42  ;;  %v1271_v21 = vmul.f32 %v2596_v55, %v2596_v55 }
 0x1c0   : > { %v1198_v43 = vadd.f32 %v1197_v51, %v2594_v47  ;;  %v1330_v53 = vadd.f32 %v1329_v48, %v1267_v57  ;;  %v1272_v47 = vmul.f32 %v2610_v18, %v2610_v18 }
 0x1c2   : > { %v1331_v56 = vadd.f32 %v1330_v53, %v1268_v16  ;;  %v1199_v27 = vadd.f32 %v1198_v43, %v2600_v60 }
 0x1c4   : > { %v1200_v50 = vadd.f32 %v2592_v44, %v1199_v27  ;;  %v1332_v63 = vadd.f32 %v1331_v56, %v1269_v59  ;;  %v1274_v44 = vmul.f32 %v2608_v15, %v2608_v15 }
 0x1c6   : > { %v1333_v41 = vadd.f32 %v1332_v63, %v1270_v14  ;;  %v1201_v1 = vadd.f32 %v2596_v55, %v1200_v50  ;;  %v1275_v55 = vmul.f32 %v2612_v26, %v2612_v26 }
 0x1c8   : > { %v1202_v2 = vadd.f32 %v1201_v1, %v2610_v18  ;;  %v1334_v45 = vadd.f32 %v1333_v41, %v1271_v21  ;;  %v1276_v18 = vmul.f32 %v2626_v58, %v2626_v58 }
 0x1ca   : > { %v1335_v4 = vadd.f32 %v1334_v45, %v1272_v47  ;;  %v1203_v60 = vadd.f32 %v1202_v2, %v2616_v32 }
 0x1cc   : > { %v1204_v0 = vadd.f32 %v2608_v15, %v1203_v60  ;;  %v1336_v7 = vadd.f32 %v1335_v4, %v1273_v6  ;;  %v1277_v15 = vmul.f32 %v2634_v8, %v2634_v8 }
 0x1ce   : > { %v1337_v10 = vadd.f32 %v1336_v7, %v1274_v44  ;;  %v1205_v11 = vadd.f32 %v2612_v26, %v1204_v0  ;;  %v1279_v26 = vmul.f32 %v2630_v3, %v2630_v3 }
 0x1d0   : > { %v1206_v9 = vadd.f32 %v1205_v11, %v2626_v58  ;;  %v1338_v12 = vadd.f32 %v1337_v10, %v1275_v55 }
 0x1d2   : > { %v1339_v62 = vadd.f32 %v1338_v12, %v1276_v18  ;;  %v1207_v32 = vadd.f32 %v1206_v9, %v2634_v8 }
 0x1d4   : > { %v1208_v17 = vadd.f32 %v2624_v54, %v1207_v32  ;;  %v1340_v5 = vadd.f32 %v1339_v62, %v1277_v15 }
 0x1d6   : > { %v1209_v19 = vadd.f32 %v2630_v3, %v1208_v17  ;;  %v1341_v58 = vadd.f32 %v1340_v5, %v1278_v13 }
 0x1d8   : > { %v1210_v20 = vrot.slane %v1209_v19, 4  ;;  %v1342_v24 = vadd.f32 %v1341_v58, %v1279_v26 }
 0x1da   : > { %v1211_v23 = vadd.f32 %v1210_v20, %v1209_v19  ;;  %v1343_v25 = vrot.slane %v1342_v24, 4 }
 0x1dc   : > { %v1212_v33 = vrot.slane %v1211_v23, 2  ;;  %v1344_v8 = vadd.f32 %v1343_v25, %v1342_v24 }
 0x1de   : > { %v1213_v30 = vadd.f32 %v1212_v33, %v1211_v23  ;;  %v1345_v22 = vrot.slane %v1344_v8, 2 }
 0x1e0   : > { %v1346_v54 = vadd.f32 %v1345_v22, %v1344_v8  ;;  %v1214_v34 = vrot.slane %v1213_v30, 1 }
 0x1e2   : > { %v1347_v29 = vrot.slane %v1346_v54, 1  ;;  %v1215_v35 = vadd.f32 %v1214_v34, %v1213_v30 }
 0x1e4   : > { %v1348_v3 = vadd.f32 %v1347_v29, %v1346_v54 }
 0x1e6   : > { %v1353_v36 = vsel %vm1352_vm0, %v1348_v3, 0.0 }
 0x1e7   : > { %v1354_v52 = vsel %vm1351_vm1, %v1215_v35, %v1353_v36 }
 0x1e8   : > { %1355 = vst [vmem:[%s214_s4] sm:$0xff] %v1354_v52 }
 0x1e9   : > { %2224 = shalt.err (!%p2221_p0)
}
 0x1ea   : > { %s2225_s6 = scalar_lea.hbm %s2774_s27, 128  ;;  %s2229_s10 = scalar_lea.hbm %s2821_s3, 256 }
 0x1eb   : > { %p2226_p5 = scmp.ne.s32.totalorder %s2774_s27, %s2225_s6  ;;  %p2230_p4 = scmp.lt.u32.totalorder %s2774_s27, %s2821_s3 }
 0x1ec   : > { %p2231_p6 = scmp.lt.u32.totalorder %s2229_s10, %s2225_s6  ;;  %p2233_p10 = scmp.lt.u32.totalorder %s2225_s6, %s2774_s27 }
 0x1ed   : > { %p2227_p11 = pnand %p2226_p5, %p2409_p12 }
 0x1ee   : > { %p2232_p8 = por %p2231_p6, %p2230_p4 }
 0x1ef   : > { %p2228_p2 = pneg %p2227_p11 }
 0x1f0   : > { %p2234_p13 = por %p2233_p10, %p2232_p8 }
 0x1f2   : > { %p2235_p3 = pnand %p2234_p13, %p2228_p2 }
 0x1f4   : > { %2238 = shalt.err (!%p2235_p3)
}
 0x1f5   : > { %2026 = dma.vmem_to_hbm [thread:$0]  (%p2409_p12), %s2776_s25, 128, %s2774_s27, %s1362_s28  }
 0x1f6 PF: > { %s1403_s20 = sand.u32 1, %s2273_s12   ;;  %p2836_p7 = scmp.ne.s32.totalorder %s2826_s19, 0 }
 0x1f7   : > { %p2837_p9 = scmp.ge.s32.totalorder %s2285_s15, 2  ;;  %s1404_s8 = scalar_lea.sflag [#allocation4], %s1403_s20 }
 0x1f9   : > { %p2038_p1 = pnand %p2837_p9, %p2836_p7 }
 0x1fb   : > { %2264 = dma.done.wait (!%p2038_p1), %s1404_s8, 4096  }
 0x1fc   : > { %2266 = vsyncadd (!%p2038_p1), %s1404_s8, 4294963200  ;;  %s1413_s9 = scalar_lea.sflag [#allocation9], %s1403_s20 }
 0x1fd   : > { %2268 = dma.done.wait (!%p2038_p1), %s1413_s9, 128  }
 0x1fe   : > { %2270 = vsyncadd (!%p2038_p1), %s1413_s9, 4294967168  ;;  %p21_p12 = scmp.ge.s32.totalorder %s2371_s24, 4   ;;  %s2838_s12 = smov %s2277_s13 }
 0x1ff   : > { %s2839_s13 = smov %s2281_s14  ;;  %s2840_s14 = smov %s2405_s17 }
 0x200   : > { %s2841_s15 = smov %s2371_s24  ;;  %23 = sbr.rel (!%p21_p12) target bundleno = 8 (0x8), region = 94 }
 0x207   :  { %1418 = vsyncpa [#allocation3], 1 }
 0x208   :  { %1420 = vsyncpa [#allocation3 + $0x1], 1 }
 0x209   :  { %1421 = vsyncpa [#allocation6], 1 }
 0x20a   :  { %1422 = vsyncpa [#allocation4], 1 }
 0x20b   :  { %1424 = vsyncpa [#allocation4 + $0x1], 1 }
 0x20c   :  { %1425 = vsyncpa [#allocation9], 1 }
 0x20d   :  { %1427 = vsyncpa [#allocation9 + $0x1], 1 }

</bundles_post_ra>
